<compile_context>
chip_gen: v7x
topology: tpu7x:2x2x1
jax: 0.10.0
libtpu: 0.0.40
codegen_flags: <defaults>
</compile_context>

<pallas_src>
import functools

import jax
import jax.numpy as jnp
import numpy as np
from jax.experimental import pallas as pl
from jax.experimental.pallas import tpu as pltpu


# ----------------------------- in-kernel helpers -----------------------------

def _act(x, use_softmax):
    """Channel activation: softmax over axis 0 ('heart') or sigmoid."""
    if use_softmax:
        m = jnp.max(x, axis=0, keepdims=True)
        e = jnp.exp(x - m)
        return e / jnp.sum(e, axis=0, keepdims=True)
    return jax.nn.sigmoid(x)


def _prob_and_logprob(x, use_softmax):
    """Return (p, log_p) sharing one exp / log-sum-exp (EUP reuse, no log(0))."""
    if use_softmax:
        m = jnp.max(x, axis=0, keepdims=True)
        z = x - m
        e = jnp.exp(z)
        s = jnp.sum(e, axis=0, keepdims=True)
        return e / s, z - jnp.log(s)
    return jax.nn.sigmoid(x), jax.nn.log_sigmoid(x)


def _log_softmax_c(x):
    m = jnp.max(x, axis=0, keepdims=True)
    z = x - m
    return z - jnp.log(jnp.sum(jnp.exp(z), axis=0, keepdims=True))


def _top2(p):
    """Largest and second-largest value along axis 0 (duplicates handled)."""
    c_dim = p.shape[0]
    m1 = p[0]
    m2 = jnp.full_like(p[0], -jnp.inf)
    for c in range(1, c_dim):  # static unrolled loop, C is small
        v = p[c]
        m2 = jnp.maximum(m2, jnp.minimum(m1, v))
        m1 = jnp.maximum(m1, v)
    return m1, m2


# --------------------------------- kernels -----------------------------------
# Block shapes: inputs (1, C, TILE_HW), output (1, 1, TILE_HW).  All channel
# reductions happen over axis 0 of the (C, TILE_HW) in-kernel tile.

def k_entropy(xm_ref, o_ref, *, use_softmax):
    p, log_p = _prob_and_logprob(xm_ref[0].astype(jnp.float32), use_softmax)
    o_ref[...] = jnp.sum(-p * log_p, axis=0)[None, None, :]


def k_cross_entropy(xm_ref, xa_ref, o_ref, *, use_softmax):
    # net_out == 'heart': CrossEntropyLoss(logits, soft targets = softmax(aug))
    del use_softmax
    log_p = _log_softmax_c(xm_ref[0].astype(jnp.float32))
    q = _act(xa_ref[0].astype(jnp.float32), True)
    o_ref[...] = (-jnp.sum(q * log_p, axis=0))[None, None, :]


def k_top2diff(xm_ref, o_ref, *, use_softmax):
    p = _act(xm_ref[0].astype(jnp.float32), use_softmax)
    m1, m2 = _top2(p)
    o_ref[...] = (1.0 - (m1 - m2))[None, None, :]


def k_top2diff_diff(xm_ref, xa_ref, o_ref, *, use_softmax):
    p = _act(xm_ref[0].astype(jnp.float32), use_softmax)
    q = _act(xa_ref[0].astype(jnp.float32), use_softmax)
    pm1, pm2 = _top2(p)
    qm1, qm2 = _top2(q)
    o_ref[...] = ((pm1 - pm2) - (qm1 - qm2))[None, None, :]


def k_kld_entr(xm_ref, xa_ref, o_ref, *, use_softmax):
    p, log_p = _prob_and_logprob(xm_ref[0].astype(jnp.float32), use_softmax)
    q = _act(xa_ref[0].astype(jnp.float32), use_softmax)
    log_q_shift = jnp.log(q + 1e7)  # faithful to the (odd) +10000000.0 in source
    entropy = jnp.sum(-p * log_p, axis=0)
    kld = jnp.sum(p * (log_p - log_q_shift), axis=0)
    o_ref[...] = (entropy * kld)[None, None, :]


def k_mse_entr(xm_ref, xa_ref, o_ref, *, use_softmax):
    p, log_p = _prob_and_logprob(xm_ref[0].astype(jnp.float32), use_softmax)
    q = _act(xa_ref[0].astype(jnp.float32), use_softmax)
    entropy = jnp.sum(-p * log_p, axis=0)
    mse = jnp.mean((p - q) ** 2, axis=0)
    o_ref[...] = (entropy * mse)[None, None, :]


def k_centr_entr(xm_ref, xa_ref, o_ref, *, use_softmax):
    # net_out == 'heart': CE applied to probabilities (faithful to source).
    del use_softmax
    p, log_p = _prob_and_logprob(xm_ref[0].astype(jnp.float32), True)
    q = _act(xa_ref[0].astype(jnp.float32), True)
    entropy = jnp.sum(-p * log_p, axis=0)
    ce = -jnp.sum(q * _log_softmax_c(p), axis=0)
    o_ref[...] = (entropy * ce)[None, None, :]


def k_diff_grad(xm_ref, xa_ref, o_ref, *, use_softmax):
    p = _act(xm_ref[0].astype(jnp.float32), use_softmax)
    q = _act(xa_ref[0].astype(jnp.float32), use_softmax)
    c_dim = p.shape[0]
    # first-occurrence argmax along channels + gather of q at that channel
    m1 = p[0]
    q_sel = q[0]
    for c in range(1, c_dim):
        cond = p[c] > m1
        m1 = jnp.where(cond, p[c], m1)
        q_sel = jnp.where(cond, q[c], q_sel)
    diff = m1[None] - p
    diff_aug = q_sel[None] - q
    u = (diff - diff_aug) / (diff + 1e-9)
    u = jnp.where(diff <= 0, 0.0, u)
    o_ref[...] = jnp.max(u, axis=0)[None, None, :]


def k_mse(xm_ref, xa_ref, o_ref, *, use_softmax):
    p = _act(xm_ref[0].astype(jnp.float32), use_softmax)
    q = _act(xa_ref[0].astype(jnp.float32), use_softmax)
    p = p - jnp.min(p, axis=0, keepdims=True)
    sp = jnp.sum(p, axis=0, keepdims=True)
    p = p / jnp.where(sp == 0, 1.0, sp)  # guard degenerate all-equal pixels
    q = q - jnp.min(q, axis=0, keepdims=True)
    sq = jnp.sum(q, axis=0, keepdims=True)
    q = q / jnp.where(sq == 0, 1.0, sq)
    o_ref[...] = jnp.mean((p - q) ** 2, axis=0)[None, None, :]


# method -> (kernel, number of inputs actually read)
_KERNELS = {
    "entropy": (k_entropy, 1),
    "cross_entropy": (k_cross_entropy, 2),
    "top2diff": (k_top2diff, 1),
    "top2diff_diff": (k_top2diff_diff, 2),
    "kld_entr": (k_kld_entr, 2),
    "mse_entr": (k_mse_entr, 2),
    "centr_entr": (k_centr_entr, 2),
    "diff_grad": (k_diff_grad, 2),
    "mse": (k_mse, 2),
}


# --------------------------------- wrapper -----------------------------------

def _pick_tile(hw, c, n_in, itemsize):
    """Lane-dense spatial tile (multiple of 128), sized for v5e's 16 MiB
    scoped-VMEM default (inputs are double-buffered by the BlockSpec pipeline),
    which also fits v6e/v7x comfortably."""
    lane = 128
    hw_pad = -(-hw // lane) * lane
    budget = 8 * 1024 * 1024
    per_lane = n_in * 2 * c * itemsize + 2 * 4  # dbl-buffered inputs + f32 out
    cap = max(lane, (budget // per_lane) // lane * lane)
    cap = min(cap, 16 * 1024)  # keep multiple grid points for megacore sharding
    return int(min(hw_pad, cap))


def umap_generator(x, method, net_out="heart", batch_size=1):
    """Pallas equivalent of UMapGenerator(method, net_out).forward(x, batch_size)."""
    if method == "none":
        return None
    # TODO(synk): 'kl_divergence' branch calls undefined `self.kl` in the source
    # module (bug in the reference), so it is not implemented here.
    if method not in _KERNELS:
        raise NotImplementedError(f"method={method!r} not implemented")
    if method in ("cross_entropy", "centr_entr") and net_out != "heart":
        # BCEWithLogits CE produces a (B, C, H, W) map and trips the module's
        # own shape assertion for C > 1; only the softmax path is meaningful.
        raise NotImplementedError(f"{method} only supported for net_out='heart'")

    kernel_fn, n_in = _KERNELS[method]
    n2, c, h, w = x.shape
    b = batch_size
    assert n2 == 2 * b, f"expected leading dim 2*batch_size, got {n2} vs 2*{b}"

    hw = h * w
    # Free (metadata-only) reshape; keep native dtype, kernels upcast per tile.
    x3 = x.reshape(n2, c, hw)
    tile = _pick_tile(hw, c, n_in, x3.dtype.itemsize)
    grid = (b, pl.cdiv(hw, tile))

    # main/aug halves selected purely via index_map offsets -> no HBM slicing.
    main_spec = pl.BlockSpec((1, c, tile), lambda i, j: (i, 0, j))
    aug_spec = pl.BlockSpec((1, c, tile), lambda i, j: (i + b, 0, j))
    out_spec = pl.BlockSpec((1, 1, tile), lambda i, j: (i, 0, j))

    in_specs = [main_spec] + ([aug_spec] if n_in == 2 else [])
    operands = (x3,) * n_in  # identical operands, XLA dedupes the buffer

    kernel = functools.partial(kernel_fn, use_softmax=(net_out == "heart"))
    out = pl.pallas_call(
        kernel,
        out_shape=jax.ShapeDtypeStruct((b, 1, hw), jnp.float32),
        grid=grid,
        in_specs=in_specs,
        out_specs=out_spec,
        compiler_params=pltpu.CompilerParams(
            dimension_semantics=("parallel", "parallel")),
    )(*operands)
    return out.reshape(b, 1, h, w)


# ------------------------------ plain-JAX reference ---------------------------

def _ref_umap(x, method, b, net_out="heart"):
    act = (lambda a: jax.nn.softmax(a, axis=1)) if net_out == "heart" else jax.nn.sigmoid
    entr = lambda p: jnp.where(p > 0, -p * jnp.log(p), 0.0)
    xm, xa = x[:b], x[b:]
    if method == "entropy":
        return jnp.sum(entr(act(xm)), axis=1, keepdims=True)
    if method == "cross_entropy":
        return -jnp.sum(act(xa) * jax.nn.log_softmax(xm, axis=1), axis=1, keepdims=True)
    if method == "top2diff":
        ps = jnp.sort(act(xm), axis=1)
        return 1.0 - (ps[:, -1:] - ps[:, -2:-1])
    if method == "top2diff_diff":
        ps = jnp.sort(act(xm), axis=1)
        qs = jnp.sort(act(xa), axis=1)
        return (ps[:, -1:] - ps[:, -2:-1]) - (qs[:, -1:] - qs[:, -2:-1])
    if method == "kld_entr":
        p, q = act(xm), act(xa)
        e = jnp.sum(entr(p), axis=1, keepdims=True)
        kld = jnp.sum(p * (jnp.log(p) - jnp.log(q + 1e7)), axis=1, keepdims=True)
        return e * kld
    if method == "mse_entr":
        p, q = act(xm), act(xa)
        e = jnp.sum(entr(p), axis=1, keepdims=True)
        mse = jnp.mean((p - q) ** 2, axis=1, keepdims=True)
        return e * mse
    if method == "centr_entr":
        p, q = act(xm), act(xa)
        e = jnp.sum(entr(p), axis=1, keepdims=True)
        ce = -jnp.sum(q * jax.nn.log_softmax(p, axis=1), axis=1, keepdims=True)
        return e * ce
    if method == "diff_grad":
        p, q = act(xm), act(xa)
        m1 = jnp.max(p, axis=1, keepdims=True)
        idx = jnp.argmax(p, axis=1, keepdims=True)
        q_sel = jnp.take_along_axis(q, idx, axis=1)
        d, da = m1 - p, q_sel - q
        u = (d - da) / (d + 1e-9)
        u = jnp.where(d <= 0, 0.0, u)
        return jnp.max(u, axis=1, keepdims=True)
    if method == "mse":
        xs = act(x)
        xs = xs - jnp.min(xs, axis=1, keepdims=True)
        xs = xs / jnp.sum(xs, axis=1, keepdims=True)
        return jnp.mean((xs[:b] - xs[b:]) ** 2, axis=1, keepdims=True)
    raise NotImplementedError(method)


# ----------------------------------- main -------------------------------------

if __name__ == "__main__":
    key = jax.random.PRNGKey(0)
    B, C, H, W = 2, 4, 16, 16
    x = jax.random.normal(key, (2 * B, C, H, W), dtype=jnp.float32)

    for method in _KERNELS:
        out = umap_generator(x, method, net_out="heart", batch_size=B)
        out = jax.block_until_ready(out)
        assert out.shape == (B, 1, H, W), (method, out.shape)
        assert not bool(jnp.isnan(out).any()), f"{method}: umap contains nan values"
        ref = np.asarray(_ref_umap(x, method, B, net_out="heart"))
        if method == "diff_grad":
            rtol, atol = 1e-2, 1e-2  # division by tiny prob gaps amplifies fp noise
        else:
            rtol, atol = 1e-4, 1e-4
        np.testing.assert_allclose(np.asarray(out), ref, rtol=rtol, atol=atol,
                                   err_msg=f"mismatch for method={method}")

    print("KERNEL_OK")
</pallas_src>

<mosaic_0001>
module attributes {stable_mosaic.version = 11 : i64} {
  func.func @k_entropy(%arg0: i32, %arg1: i32, %arg2: memref<1x4x256xf32, #tpu.memory_space<vmem>>, %arg3: memref<1x1x256xf32, #tpu.memory_space<vmem>>) attributes {dimension_semantics = [#tpu.dimension_semantics<parallel>, #tpu.dimension_semantics<parallel>], iteration_bounds = array<i64: 2, 1>, scalar_prefetch = 0 : i64, scratch_operands = 0 : i64, tpu.core_type = #tpu.core_type<tc>, window_params = [{transform_indices = @transform_0, window_bounds = array<i64: 1, 4, 256>}, {transform_indices = @transform_1, window_bounds = array<i64: 1, 1, 256>}]} {
    %c0 = arith.constant 0 : index
    %c0_0 = arith.constant 0 : index
    %c0_1 = arith.constant 0 : index
    %0 = vector.load %arg2[%c0, %c0_0, %c0_1] : memref<1x4x256xf32, #tpu.memory_space<vmem>>, vector<1x4x256xf32>
    %1 = vector.shape_cast %0 : vector<1x4x256xf32> to vector<4x256xf32>
    %cst = arith.constant dense<0xFF800000> : vector<256xf32>
    %2 = vector.multi_reduction <maximumf>, %1, %cst [0] : vector<4x256xf32> to vector<256xf32>
    %3 = vector.shape_cast %2 : vector<256xf32> to vector<1x256xf32>
    %4 = vector.broadcast %3 : vector<1x256xf32> to vector<4x256xf32>
    %5 = arith.subf %1, %4 : vector<4x256xf32>
    %6 = math.exp %5 : vector<4x256xf32>
    %cst_2 = arith.constant dense<0.000000e+00> : vector<256xf32>
    %7 = vector.multi_reduction <add>, %6, %cst_2 [0] : vector<4x256xf32> to vector<256xf32>
    %8 = vector.shape_cast %7 : vector<256xf32> to vector<1x256xf32>
    %9 = vector.broadcast %8 : vector<1x256xf32> to vector<4x256xf32>
    %10 = arith.divf %6, %9 : vector<4x256xf32>
    %11 = math.log %8 : vector<1x256xf32>
    %12 = vector.broadcast %11 : vector<1x256xf32> to vector<4x256xf32>
    %13 = arith.subf %5, %12 : vector<4x256xf32>
    %cst_3 = arith.constant 0.000000e+00 : f32
    %14 = vector.broadcast %cst_3 : f32 to vector<4x256xf32>
    %15 = arith.subf %14, %10 : vector<4x256xf32>
    %16 = arith.mulf %15, %13 : vector<4x256xf32>
    %cst_4 = arith.constant dense<0.000000e+00> : vector<256xf32>
    %17 = vector.multi_reduction <add>, %16, %cst_4 [0] : vector<4x256xf32> to vector<256xf32>
    %18 = vector.shape_cast %17 : vector<256xf32> to vector<1x1x256xf32>
    %c0_5 = arith.constant 0 : index
    %c0_6 = arith.constant 0 : index
    %c0_7 = arith.constant 0 : index
    %19 = vector.load %arg3[%c0_5, %c0_6, %c0_7] : memref<1x1x256xf32, #tpu.memory_space<vmem>>, vector<1x1x256xf32>
    tpu.vector_store %arg3[%c0_5, %c0_6, %c0_7], %18 {strides = array<i32>} : memref<1x1x256xf32, #tpu.memory_space<vmem>>, vector<1x1x256xf32>,
    return
  }
  func.func @transform_0(%arg0: i32, %arg1: i32) -> (i32, i32, i32) {
    %c0_i32 = arith.constant 0 : i32
    %c0_i32_0 = arith.constant 0 : i32
    return %arg0, %c0_i32, %arg1 : i32, i32, i32
  }
  func.func @transform_1(%arg0: i32, %arg1: i32) -> (i32, i32, i32) {
    %c0_i32 = arith.constant 0 : i32
    %c0_i32_0 = arith.constant 0 : i32
    return %arg0, %c0_i32, %arg1 : i32, i32, i32
  }
}

</mosaic_0001>

<bundles_post_ra>
// kernel: tpu_custom_call.1
= control target key start
LH: loop header
LB: loop body
LE: loop exit
PB: predicated region body
PF: predicated region fallthrough
CT: control target
= control target key end

     0   :  { %6 = vsyncpa [#allocation3], 0  ;;  %s749_s0 = inlined_call_operand.hbm [shape: f32[4,4,256], index: 0, kind: input, shape index: {}]   ;;  %s750_s1 = inlined_call_operand.hbm [shape: f32[2,1,256], index: 1, kind: output, shape index: {}]  }
   0x1   :  { %8 = vsyncpa [#allocation3 + $0x1], 0 }
   0x2   :  { %9 = vsyncpa [#allocation4], 0 }
   0x3   :  { %11 = vsyncpa [#allocation4 + $0x1], 0  ;;  %s570_s6 = smov 0   ;;  %s572_s7 = smov 0  }
   0x4   :  { %s574_s8 = smov 0   ;;  %s576_s9 = smov 0  }
   0x5   :  { %s578_s10 = smov 0   ;;  %s580_s11 = smov 0  }
   0x6 LB: > { %s354_s12 = sadd.s32 4294967295, %s555_s11   ;;  %s355_s13 = sadd.s32 4294967294, %s555_s11   ;;  %s555_s11 = sphi %s580_s11, %s17_s11   ;;  %s551_s10 = sphi %s578_s10, %s766_s10   ;;  %s547_s9 = sphi %s576_s9, %s765_s9   ;;  %s543_s8 = sphi %s574_s8, %s764_s8   ;;  %s539_s7 = sphi %s572_s7, %s763_s7   ;;  %s535_s6 = sphi %s570_s6, %s762_s6  }
   0x7   : > { %s29_s14 = sadd.s32 1, %s551_s10  ;;  %s38_s15 = sadd.s32 1, %s543_s8 }
   0x8   : > { %p31_p0 = scmp.ge.s32.totalorder %s29_s14, 2  ;;  %p45_p1 = scmp.ne.s32.totalorder %s543_s8, %s539_s7 }
   0x9   : > { %p46_p2 = scmp.eq.s32.totalorder %s555_s11, 0  ;;  %p51_p3 = scmp.ne.s32.totalorder %s539_s7, %s535_s6 }
   0xa   : > { %s768_s14 = smov (%p31_p0, %s29_s14), 0  ;;  %p52_p5 = scmp.eq.s32.totalorder %s354_s12, 0 }
   0xb   : > { %p611_p4 = por %p46_p2, %p45_p1  ;;  %s33_s17 = ssub.s32 %s551_s10, %s768_s14 }
   0xc   : > { %p77_p6 = scmp.eq.s32.totalorder %s354_s12, 1  ;;  %p36_p7 = scmp.eq.s32.totalorder %s33_s17, 0 }
   0xd   : > { %p617_p8 = por %p52_p5, %p51_p3  ;;  %p83_p10 = scmp.eq.s32.totalorder %s355_s13, 1 }
   0xe   : > { %p621_p9 = por %p77_p6, %p45_p1  ;;  %p383_p13 = scmp.lt.s32.totalorder %s555_s11, 2 }
   0xf   : > { %s626_s20 = scalar_select %p36_p7, %s543_s8, %s38_s15  }
  0x10   : > { %s754_s19 = scalar_select %p621_p9, 1, 0 }
  0x11   : > { %p628_p11 = por %p83_p10, %p51_p3  ;;  %s103_s22 = sand.u32 1, %s543_s8  }
  0x12   : > { %s358_s23 = sshll.u32 %s103_s22, 3  ;;  %s369_s24 = sshll.u32 %s551_s10, 7 }
  0x13   : > { %s755_s21 = scalar_select %p628_p11, 1, 0 }
  0x14   : > { %s639_s27 = scalar_lea.hbm %s749_s0, %s369_s24  ;;  %s107_s28 = scalar_lea.vmem [#allocation2], %s358_s23 }
  0x15   : > { %s117_s29 = sshll.u32 %s107_s28, 4  ;;  %p645_p0 = pnand %p383_p13, %p611_p4  ;;  %s641_s29 = int_to_ptr.vmem [resolvable:$true] %s117_s29 }
  0x16   : > { %s104_s2 = scalar_lea.sflag [#allocation3], %s103_s22  ;;  %s443_s3 = scalar_lea.hbm %s639_s27, 128 }
  0x17   : > { %p444_p3 = scmp.ne.s32.totalorder %s639_s27, %s443_s3  ;;  %p445_p5 = pneg %p645_p0 }
  0x18   : > { %s448_s12 = scalar_lea.hbm %s749_s0, 512  ;;  %p449_p4 = scmp.lt.u32.totalorder %s639_s27, %s749_s0 }
  0x19   : > { %p446_p6 = pnand %p445_p5, %p444_p3  ;;  %p450_p10 = scmp.lt.u32.totalorder %s448_s12, %s443_s3 }
  0x1a   : > { %p452_p12 = scmp.lt.u32.totalorder %s443_s3, %s639_s27 }
  0x1b   : > { %p447_p7 = pneg %p446_p6  ;;  %p451_p13 = por %p450_p10, %p449_p4 }
  0x1d   : > { %p453_p1 = por %p452_p12, %p451_p13 }
  0x1f   : > { %p454_p2 = pnand %p453_p1, %p447_p7 }
  0x21   : > { %457 = shalt.err (!%p454_p2)
}
  0x22   : > { %s458_s16 = scalar_lea.vmem %s641_s29, 128  ;;  %s557_s17 = smov [#allocation2]  }
  0x23   : > { %p459_p3 = scmp.ne.s32.totalorder %s641_s29, %s458_s16  ;;  %s463_s22 = sshll.u32 %s557_s17, 4  ;;  %s464_s22 = int_to_ptr.vmem [resolvable:$false] %s463_s22 }
  0x24   : > { %s465_s23 = scalar_lea.vmem %s464_s22, 256  ;;  %p466_p9 = scmp.lt.s32.totalorder %s641_s29, %s464_s22 }
  0x25   : > { %p461_p6 = pnand %p459_p3, %p445_p5  ;;  %p467_p4 = scmp.lt.s32.totalorder %s465_s23, %s458_s16 }
  0x27   : > { %p462_p11 = pneg %p461_p6  ;;  %p468_p10 = por %p467_p4, %p466_p9 }
  0x29   : > { %p469_p12 = pnand %p468_p10, %p462_p11 }
  0x2b   : > { %472 = shalt.err (!%p469_p12)
}
  0x2c   : > { %378 = dma.hbm_to_vmem [thread:$0]  (!%p645_p0), %s639_s27, 128, %s641_s29, %s104_s2  }
  0x2d   : > { %p757_p1 = scmp.lt.s32.totalorder %s555_s11, 3  ;;  %p758_p2 = scmp.ge.s32.totalorder %s555_s11, 1 }
  0x2f   : > { %p123_p5 = pnand %p758_p2, %p757_p1 }
  0x30   : > { %s681_s24 = sand.u32 (!%p123_p5), 1, %s539_s7  }
  0x31   : > { %126 = sbr.rel (%p123_p5) target bundleno = 159 (0x9f), region = 24  ;;  %s362_s25 = sshll.u32 (!%p123_p5), %s681_s24, 3 }
  0x32   : > { %s129_s26 = scalar_lea.sflag (!%p123_p5), [#allocation3], %s681_s24  ;;  %s132_s28 = scalar_lea.vmem (!%p123_p5), [#allocation2], %s362_s25 }
  0x38   : > { %526 = dma.done.wait (%p617_p8), %s129_s26, 128  }
  0x39   : > { %528 = vsyncadd (%p617_p8), %s129_s26, 4294967168  ;;  %vm157_vm0 = vcmask 1043456   ;;  %v153_v0 = vld [vmem:[%s132_s28] sm:$0xff]  ;;  %v558_v54 = vmov 1966171168   ;;  %v236_v56 = vlaneseq  ;;  %s363_s18 = sshll.u32 %s681_s24, 1 }
  0x3a   : > { %v155_v1 = vcombine.high %v153_v0, %v153_v0  ;;  %v158_v2 = vsel %vm157_vm0, %v153_v0, -inf  ;;  %v234_v55 = vunpack.c.l.s4 %v558_v54  ;;  %s150_s27 = scalar_lea.vmem [#allocation5], %s363_s18  ;;  %s370_s30 = sshll.u32 %s547_s9, 5 }
  0x3b   : > { %v159_v3 = vrot.slane %v158_v2, 4  ;;  %v237_v62 = vshrl.u32 %v236_v56, 7  ;;  %s270_s29 = sshll.u32 %s150_s27, 4  ;;  %vm250_vm1 = vcmp.lt.s32.totalorder %v236_v56, 256  ;;  %s702_s4 = scalar_lea.hbm %s750_s1, %s370_s30  ;;  %s697_s29 = int_to_ptr.vmem [resolvable:$true] %s270_s29 }
  0x3c   : > { %v165_v4 = vsel %vm157_vm0, %v155_v1, -inf  ;;  %v235_v61 = vunpack.c.0.s8 %v234_v55  ;;  %s254_s5 = scalar_lea.sflag [#allocation4], %s681_s24  ;;  %s473_s12 = scalar_lea.vmem %s697_s29, 32 }
  0x3d   : > { %v160_v5 = vmax.f32 %v158_v2, %v159_v3  ;;  %v166_v6 = vrot.slane %v165_v4, 4  ;;  %p474_p8 = scmp.ne.s32.totalorder %s697_s29, %s473_s12  ;;  %p759_p9 = scmp.ne.s32.totalorder %s754_s19, 0 }
  0x3e   : > { %v238_v2 = vsub.s32 %v235_v61, %v237_v62  ;;  %s559_s9 = smov [#allocation5]  }
  0x3f   : > { %v161_v7 = vrot.slane %v160_v5, 2  ;;  %v167_v8 = vmax.f32 %v165_v4, %v166_v6  ;;  %p475_p11 = pnand %p474_p8, %p759_p9  ;;  %s477_s13 = sshll.u32 %s559_s9, 4  ;;  %s478_s13 = int_to_ptr.vmem [resolvable:$false] %s477_s13 }
  0x40   : > { %s479_s15 = scalar_lea.vmem %s478_s13, 64  ;;  %p480_p7 = scmp.lt.s32.totalorder %s697_s29, %s478_s13 }
  0x41   : > { %v162_v9 = vmax.f32 %v160_v5, %v161_v7  ;;  %v168_v10 = vrot.slane %v167_v8, 2  ;;  %p476_p0 = pneg %p475_p11  ;;  %p481_p13 = scmp.lt.s32.totalorder %s479_s15, %s473_s12 }
  0x43   : > { %v163_v11 = vrot.slane %v162_v9, 1  ;;  %v169_v12 = vmax.f32 %v167_v8, %v168_v10  ;;  %p482_p3 = por %p481_p13, %p480_p7 }
  0x45   : > { %v164_v13 = vmax.f32 %v162_v9, %v163_v11  ;;  %v170_v14 = vrot.slane %v169_v12, 1  ;;  %p483_p6 = pnand %p482_p3, %p476_p0 }
  0x47   : > { %v171_v15 = vmax.f32 %v169_v12, %v170_v14 }
  0x49   : > { %v174_v16 = vcombine.low %v164_v13, %v171_v15 }
  0x4b   : > { %v176_v17 = vsub.f32 %v153_v0, %v174_v16 }
  0x4d   : > { %v177_v18 = vmul.f32 1.442695, %v176_v17 }
  0x4f   : > { %435 = vpow2.f32 %v177_v18 }
  0x59   : > { %v436_v19 = vpop.eup %435 }
  0x5a   : > { %v180_v20 = vcombine.high %v436_v19, %v436_v19  ;;  %v182_v21 = vsel %vm157_vm0, %v436_v19, 0.0 }
  0x5b   : > { %v183_v22 = vrot.slane %v182_v21, 4 }
  0x5c   : > { %v189_v23 = vsel %vm157_vm0, %v180_v20, 0.0 }
  0x5d   : > { %v184_v24 = vadd.f32 %v183_v22, %v182_v21  ;;  %v190_v25 = vrot.slane %v189_v23, 4 }
  0x5f   : > { %v185_v26 = vrot.slane %v184_v24, 2  ;;  %v191_v27 = vadd.f32 %v190_v25, %v189_v23 }
  0x61   : > { %v186_v28 = vadd.f32 %v185_v26, %v184_v24  ;;  %v192_v29 = vrot.slane %v191_v27, 2 }
  0x63   : > { %v187_v30 = vrot.slane %v186_v28, 1  ;;  %v193_v31 = vadd.f32 %v192_v29, %v191_v27 }
  0x65   : > { %v188_v32 = vadd.f32 %v187_v30, %v186_v28  ;;  %v194_v33 = vrot.slane %v193_v31, 1 }
  0x67   : > { %v195_v34 = vadd.f32 %v194_v33, %v193_v31  ;;  %437 = vlog2.f32 %v188_v32 }
  0x69   : > { %v198_v35 = vcombine.low %v188_v32, %v195_v34  ;;  %439 = vlog2.f32 %v195_v34 }
  0x6b   : > { %441 = vrcp.f32 %v198_v35 }
  0x71   : > { %v438_v36 = vpop.eup %437 }
  0x72   : > { %v203_v37 = vmul.f32 0.6931472, %v438_v36 }
  0x73   : > { %v440_v38 = vpop.eup %439 }
  0x74   : > { %v205_v39 = vmul.f32 0.6931472, %v440_v38 }
  0x75   : > { %v442_v40 = vpop.eup %441 }
  0x76   : > { %v208_v41 = vcombine.low %v203_v37, %v205_v39  ;;  %v201_v42 = vmul.f32 %v442_v40, %v436_v19 }
  0x78   : > { %v210_v43 = vsub.f32 %v176_v17, %v208_v41  ;;  %v211_v44 = vsub.f32 0.0, %v201_v42 }
  0x7a   : > { %v212_v45 = vmul.f32 %v211_v44, %v210_v43 }
  0x7c   : > { %v214_v46 = vcombine.high %v212_v45, %v212_v45  ;;  %v216_v47 = vsel %vm157_vm0, %v212_v45, 0.0 }
  0x7d   : > { %v217_v48 = vrot.slane %v216_v47, 4 }
  0x7e   : > { %v223_v49 = vsel %vm157_vm0, %v214_v46, 0.0 }
  0x7f   : > { %v218_v50 = vadd.f32 %v217_v48, %v216_v47  ;;  %v224_v51 = vrot.slane %v223_v49, 4 }
  0x81   : > { %v219_v52 = vrot.slane %v218_v50, 2  ;;  %v225_v53 = vadd.f32 %v224_v51, %v223_v49 }
  0x83   : > { %v220_v57 = vadd.f32 %v219_v52, %v218_v50  ;;  %v226_v58 = vrot.slane %v225_v53, 2 }
  0x85   : > { %v221_v59 = vrot.slane %v220_v57, 1  ;;  %v227_v60 = vadd.f32 %v226_v58, %v225_v53 }
  0x87   : > { %v222_v63 = vadd.f32 %v221_v59, %v220_v57  ;;  %v228_v0 = vrot.slane %v227_v60, 1 }
  0x89   : > { %v229_v1 = vadd.f32 %v228_v0, %v227_v60 }
  0x8b   : > { %v232_v3 = vcombine.low %v222_v63, %v229_v1 }
  0x8d   : > { %v239_v4 = vrot.slane %v232_v3, %v238_v2 }
  0x8f   : > { %v246_v5 = vrot.slane %v239_v4, %v238_v2 }
  0x91   : > { %252 = vst.msk [vmem:[%s150_s27] sm:$0x3] %vm250_vm1, %v246_v5 }
  0x92   : > { %486 = shalt.err (!%p483_p6)
}
  0x93   : > { %s487_s16 = scalar_lea.hbm %s702_s4, 32  ;;  %s491_s23 = scalar_lea.hbm %s750_s1, 64 }
  0x94   : > { %p488_p4 = scmp.ne.s32.totalorder %s702_s4, %s487_s16  ;;  %p492_p1 = scmp.lt.u32.totalorder %s702_s4, %s750_s1 }
  0x95   : > { %p493_p2 = scmp.lt.u32.totalorder %s491_s23, %s487_s16  ;;  %p495_p8 = scmp.lt.u32.totalorder %s487_s16, %s702_s4 }
  0x96   : > { %p489_p10 = pnand %p488_p4, %p759_p9 }
  0x97   : > { %p494_p5 = por %p493_p2, %p492_p1 }
  0x98   : > { %p490_p12 = pneg %p489_p10 }
  0x99   : > { %p496_p11 = por %p495_p8, %p494_p5 }
  0x9b   : > { %p497_p0 = pnand %p496_p11, %p490_p12 }
  0x9d   : > { %500 = shalt.err (!%p497_p0)
}
  0x9e   : > { %373 = dma.vmem_to_hbm [thread:$0]  (%p759_p9), %s697_s29, 32, %s702_s4, %s254_s5  }
  0x9f PF: > { %s282_s26 = sand.u32 1, %s535_s6   ;;  %p760_p7 = scmp.ne.s32.totalorder %s755_s21, 0 }
  0xa0   : > { %p761_p13 = scmp.ge.s32.totalorder %s555_s11, 2  ;;  %s283_s28 = scalar_lea.sflag [#allocation4], %s282_s26 }
  0xa2   : > { %p380_p3 = pnand %p761_p13, %p760_p7 }
  0xa4   : > { %530 = dma.done.wait (!%p380_p3), %s283_s28, 32  }
  0xa5   : > { %532 = vsyncadd (!%p380_p3), %s283_s28, 4294967264  ;;  %s17_s11 = sadd.s32 1, %s555_s11   ;;  %s762_s6 = smov %s539_s7 }
  0xa6   : > { %p14_p6 = scmp.ge.s32.totalorder %s17_s11, 4   ;;  %s763_s7 = smov %s543_s8 }
  0xa7   : > { %s764_s8 = smov %s626_s20  ;;  %s765_s9 = smov %s551_s10 }
  0xa8   : > { %s766_s10 = smov %s768_s14  ;;  %16 = sbr.rel (!%p14_p6) target bundleno = 6 (0x6), region = 69 }
  0xaf   :  { %288 = vsyncpa [#allocation3], 1 }
  0xb0   :  { %290 = vsyncpa [#allocation3 + $0x1], 1 }
  0xb1   :  { %291 = vsyncpa [#allocation4], 1 }
  0xb2   :  { %293 = vsyncpa [#allocation4 + $0x1], 1 }

</bundles_post_ra>
